<compile_context>
chip_gen: v7x
topology: tpu7x:2x2x1
jax: 0.10.0
libtpu: 0.0.40
codegen_flags: <defaults>
</compile_context>

<pallas_src>
import functools

import jax
import jax.numpy as jnp
from jax.experimental import pallas as pl
from jax.experimental.pallas import tpu as pltpu


def _channel_reduce_kernel(x_ref, sum_ref, max_ref, *, C_total, c_tile):
    """Grid step (n, c): accumulate channel sum / max of one lane-dense tile.

    x_ref:   (1, c_tile, HW)  VMEM  input channel tile (native dtype)
    sum_ref: (1, 1, HW)       VMEM  f32 running channel sum  (resident over c)
    max_ref: (1, 1, HW)       VMEM  f32 running channel max  (resident over c)
    """
    c = pl.program_id(1)
    xt = x_ref[0]                                     # (c_tile, HW)

    if C_total % c_tile != 0:
        # cdiv grid: mask out-of-range channels of the (partial) last tile.
        ch = jax.lax.broadcasted_iota(jnp.int32, xt.shape, 0)
        valid = (c * c_tile + ch) < C_total
        xs = jnp.where(valid, xt, jnp.zeros_like(xt))
        xm = jnp.where(valid, xt, jnp.full_like(xt, -jnp.inf))
    else:
        xs = xt
        xm = xt

    # Sum accumulates in f32; max reduces in the input dtype (bf16-friendly on
    # v6e/v7x) and is widened exactly once.
    part_sum = jnp.sum(xs.astype(jnp.float32), axis=0, keepdims=True)   # (1, HW)
    part_max = jnp.max(xm, axis=0, keepdims=True).astype(jnp.float32)   # (1, HW)

    @pl.when(c == 0)
    def _init():
        sum_ref[0] = part_sum
        max_ref[0] = part_max

    @pl.when(c != 0)
    def _accumulate():
        sum_ref[0] = sum_ref[0] + part_sum
        max_ref[0] = jnp.maximum(max_ref[0], part_max)


def _conv_sigmoid_kernel(sum_ref, max_ref, w_ref, o_ref, spad, mpad, *, K):
    """Grid step (n,): KxK conv over zero-padded [avg, max] maps + sigmoid.

    sum_ref: (1, H, W)  VMEM  f32 channel sum (1/C folded into the avg taps)
    max_ref: (1, H, W)  VMEM  f32 channel max
    w_ref:   (2*K*K,)   SMEM  f32 taps: [avg taps (pre-scaled), max taps]
    o_ref:   (1, H, W)  VMEM  output block
    spad/mpad: (R0+H+pad, C0+W+pad) VMEM f32 zero-padded maps; the interior
               starts at an (8, 128)-aligned offset >= pad, so the interior
               store is aligned and every conv tap is a plain ref slice.
    """
    pad = K // 2
    H, W = o_ref.shape[1], o_ref.shape[2]
    R0 = ((pad + 7) // 8) * 8
    C0 = ((pad + 127) // 128) * 128

    # Zero the (tiny) padded buffers every step: with a "parallel" batch axis
    # each TensorCore owns private scratch, so a one-time init is not safe.
    spad[...] = jnp.zeros_like(spad)
    mpad[...] = jnp.zeros_like(mpad)
    spad[R0:R0 + H, C0:C0 + W] = sum_ref[0]
    mpad[R0:R0 + H, C0:C0 + W] = max_ref[0]

    r0 = R0 - pad
    c0 = C0 - pad
    # Two independent accumulators; each tap is loaded as a ref slice (goes
    # through the vld slots), keeping vreg pressure low even for large maps.
    acc0 = jnp.zeros((H, W), jnp.float32)
    acc1 = jnp.zeros((H, W), jnp.float32)
    t = 0
    for ky in range(K):
        for kx in range(K):
            w_a = w_ref[ky * K + kx]                 # avg-channel tap (scaled)
            w_m = w_ref[K * K + ky * K + kx]         # max-channel tap
            a = spad[r0 + ky:r0 + ky + H, c0 + kx:c0 + kx + W]
            m = mpad[r0 + ky:r0 + ky + H, c0 + kx:c0 + kx + W]
            contrib = w_a * a + w_m * m
            if t % 2 == 0:
                acc0 = acc0 + contrib
            else:
                acc1 = acc1 + contrib
            t += 1

    o_ref[0] = jax.nn.sigmoid(acc0 + acc1).astype(o_ref.dtype)


def spatial_attention(x, w, kernel_size=7):
    """x: (N, C, H, W), w: (1, 2, K, K) conv weight (no bias) -> (N, 1, H, W)."""
    N, C, H, W = x.shape
    K = kernel_size
    if K % 2 != 1:
        raise ValueError("kernel_size must be odd (PyTorch padding=K//2 keeps H, W).")
    assert w.shape == (1, 2, K, K)
    pad = K // 2
    HW = H * W

    if not jnp.issubdtype(x.dtype, jnp.floating):
        x = x.astype(jnp.float32)          # sigmoid output is fractional
    out_dtype = x.dtype

    # -------- phase 1: lane-dense channel reduction (the HBM-bound part) ----
    x_flat = x.reshape(N, C, HW)           # free: NCHW is contiguous in H*W

    itemsize = jnp.dtype(x.dtype).itemsize
    sub = 8 * max(1, 4 // itemsize)        # sublane packing: 8 f32 / 16 bf16
    hw_lanes = ((HW + 127) // 128) * 128   # lane-padded row length
    per_ch_bytes = hw_lanes * itemsize     # padded VMEM bytes per channel

    # Per-generation VMEM budget from the real capacity (v7x: 64 MiB physical,
    # v5e/v6e: 128 MiB); leave headroom under the scoped limit.
    mib = 1024 * 1024
    try:
        vmem_cap = int(pltpu.get_tpu_info().vmem_capacity_bytes)
    except Exception:                      # conservative fallback
        vmem_cap = 64 * mib
    budget = 28 * mib if vmem_cap <= 64 * mib else 64 * mib
    # Reserve for the two double-buffered f32 accumulator output blocks.
    reserve = 2 * 2 * hw_lanes * 4 + 2 * mib
    block_budget = max(budget - reserve, mib)

    c_tile = max(1, block_budget // (2 * per_ch_bytes))   # 2x: double-buffered
    if c_tile >= C:
        c_tile = C                                        # full dim: always legal
    else:
        c_tile = max(sub, (c_tile // sub) * sub)          # (8,128)-rule friendly
    n_c = (C + c_tile - 1) // c_tile

    vmem_limit = int(min(vmem_cap * 3 // 4, 96 * mib))

    reduce_kernel = functools.partial(
        _channel_reduce_kernel, C_total=C, c_tile=c_tile)

    # TODO(synk): for N == 1 on v7x, add a second "parallel" grid axis (2-way
    # channel split with per-core partial sum/max merged in phase 2) so both
    # TensorCores share the HBM stream.
    sum_map, max_map = pl.pallas_call(
        reduce_kernel,
        grid=(N, n_c),
        in_specs=[pl.BlockSpec((1, c_tile, HW), lambda n, c: (n, c, 0))],
        out_specs=[
            pl.BlockSpec((1, 1, HW), lambda n, c: (n, 0, 0)),
            pl.BlockSpec((1, 1, HW), lambda n, c: (n, 0, 0)),
        ],
        out_shape=[
            jax.ShapeDtypeStruct((N, 1, HW), jnp.float32),
            jax.ShapeDtypeStruct((N, 1, HW), jnp.float32),
        ],
        compiler_params=pltpu.CompilerParams(
            dimension_semantics=("parallel", "arbitrary"),
            vmem_limit_bytes=vmem_limit,
        ),
    )(x_flat)

    # -------- phase 2: KxK conv + sigmoid on the tiny reduced maps ----------
    sum_hw = sum_map.reshape(N, H, W)      # free reshapes of small f32 maps
    max_hw = max_map.reshape(N, H, W)

    # Fold the 1/C mean scale into the avg-channel taps on the host.
    w32 = w.astype(jnp.float32)
    w_flat = jnp.concatenate(
        [(w32[0, 0] / C).reshape(-1), w32[0, 1].reshape(-1)])   # (2*K*K,)

    R0 = ((pad + 7) // 8) * 8
    C0 = ((pad + 127) // 128) * 128
    scratch_shape = (R0 + H + pad, C0 + W + pad)

    conv_kernel = functools.partial(_conv_sigmoid_kernel, K=K)
    out = pl.pallas_call(
        conv_kernel,
        grid=(N,),
        in_specs=[
            pl.BlockSpec((1, H, W), lambda n: (n, 0, 0)),
            pl.BlockSpec((1, H, W), lambda n: (n, 0, 0)),
            pl.BlockSpec(memory_space=pltpu.MemorySpace.SMEM),
        ],
        out_specs=pl.BlockSpec((1, H, W), lambda n: (n, 0, 0)),
        out_shape=jax.ShapeDtypeStruct((N, H, W), out_dtype),
        scratch_shapes=[
            pltpu.VMEM(scratch_shape, jnp.float32),
            pltpu.VMEM(scratch_shape, jnp.float32),
        ],
        compiler_params=pltpu.CompilerParams(
            dimension_semantics=("parallel",),
            vmem_limit_bytes=32 * mib,
        ),
    )(sum_hw, max_hw, w_flat)

    return out.reshape(N, 1, H, W)


def _reference(x, w, kernel_size=7):
    # Pure-JAX reference mirroring the PyTorch forward.
    avg = jnp.mean(x, axis=1, keepdims=True)
    mx = jnp.max(x, axis=1, keepdims=True)
    feat = jnp.concatenate([avg, mx], axis=1)
    out = jax.lax.conv_general_dilated(
        feat, w,
        window_strides=(1, 1),
        padding=[(kernel_size // 2, kernel_size // 2)] * 2,
        dimension_numbers=("NCHW", "OIHW", "NCHW"))
    return jax.nn.sigmoid(out)


if __name__ == "__main__":
    key = jax.random.PRNGKey(0)
    k_x, k_w = jax.random.split(key)

    N, C, H, W = 2, 4, 16, 16
    K = 7

    x = jax.random.normal(k_x, (N, C, H, W), dtype=jnp.float32)
    # Conv weight (out=1, in=2, K, K), no bias.
    w = jax.random.normal(k_w, (1, 2, K, K), dtype=jnp.float32) * 0.1

    out = spatial_attention(x, w, kernel_size=K)
    out = jax.block_until_ready(out)

    ref = _reference(x, w, kernel_size=K)
    assert out.shape == (N, 1, H, W)
    assert jnp.allclose(out, ref, atol=1e-5, rtol=1e-5), float(
        jnp.max(jnp.abs(out - ref)))

    print("KERNEL_OK")
</pallas_src>

<mosaic_0001>
module attributes {stable_mosaic.version = 11 : i64} {
  func.func @_channel_reduce_kernel(%arg0: i32, %arg1: i32, %arg2: memref<1x4x256xf32, #tpu.memory_space<vmem>>, %arg3: memref<1x1x256xf32, #tpu.memory_space<vmem>>, %arg4: memref<1x1x256xf32, #tpu.memory_space<vmem>>) attributes {dimension_semantics = [#tpu.dimension_semantics<parallel>, #tpu.dimension_semantics<arbitrary>], iteration_bounds = array<i64: 2, 1>, scalar_prefetch = 0 : i64, scratch_operands = 0 : i64, tpu.core_type = #tpu.core_type<tc>, window_params = [{transform_indices = @transform_0, window_bounds = array<i64: 1, 4, 256>}, {transform_indices = @transform_1, window_bounds = array<i64: 1, 1, 256>}, {transform_indices = @transform_2, window_bounds = array<i64: 1, 1, 256>}]} {
    %c0 = arith.constant 0 : index
    %c0_0 = arith.constant 0 : index
    %c0_1 = arith.constant 0 : index
    %0 = vector.load %arg2[%c0, %c0_0, %c0_1] : memref<1x4x256xf32, #tpu.memory_space<vmem>>, vector<1x4x256xf32>
    %1 = vector.shape_cast %0 : vector<1x4x256xf32> to vector<4x256xf32>
    %cst = arith.constant dense<0.000000e+00> : vector<256xf32>
    %2 = vector.multi_reduction <add>, %1, %cst [0] : vector<4x256xf32> to vector<256xf32>
    %3 = vector.shape_cast %2 : vector<256xf32> to vector<1x256xf32>
    %cst_2 = arith.constant dense<0xFF800000> : vector<256xf32>
    %4 = vector.multi_reduction <maximumf>, %1, %cst_2 [0] : vector<4x256xf32> to vector<256xf32>
    %5 = vector.shape_cast %4 : vector<256xf32> to vector<1x256xf32>
    %c0_i32 = arith.constant 0 : i32
    %6 = arith.cmpi eq, %arg1, %c0_i32 : i32
    %7 = arith.extui %6 : i1 to i32
    %c0_i32_3 = arith.constant 0 : i32
    %8 = arith.cmpi ne, %7, %c0_i32_3 : i32
    scf.if %8 {
      %c0_6 = arith.constant 0 : index
      %c0_7 = arith.constant 0 : index
      %c0_8 = arith.constant 0 : index
      %12 = vector.load %arg3[%c0_6, %c0_7, %c0_8] : memref<1x1x256xf32, #tpu.memory_space<vmem>>, vector<1x1x256xf32>
      %13 = vector.shape_cast %12 : vector<1x1x256xf32> to vector<1x256xf32>
      %14 = vector.shape_cast %3 : vector<1x256xf32> to vector<1x1x256xf32>
      tpu.vector_store %arg3[%c0_6, %c0_7, %c0_8], %14 {strides = array<i32>} : memref<1x1x256xf32, #tpu.memory_space<vmem>>, vector<1x1x256xf32>,
      %c0_9 = arith.constant 0 : index
      %c0_10 = arith.constant 0 : index
      %c0_11 = arith.constant 0 : index
      %15 = vector.load %arg4[%c0_9, %c0_10, %c0_11] : memref<1x1x256xf32, #tpu.memory_space<vmem>>, vector<1x1x256xf32>
      %16 = vector.shape_cast %15 : vector<1x1x256xf32> to vector<1x256xf32>
      %17 = vector.shape_cast %5 : vector<1x256xf32> to vector<1x1x256xf32>
      tpu.vector_store %arg4[%c0_9, %c0_10, %c0_11], %17 {strides = array<i32>} : memref<1x1x256xf32, #tpu.memory_space<vmem>>, vector<1x1x256xf32>,
    } else {
    }
    %c0_i32_4 = arith.constant 0 : i32
    %9 = arith.cmpi ne, %arg1, %c0_i32_4 : i32
    %10 = arith.extui %9 : i1 to i32
    %c0_i32_5 = arith.constant 0 : i32
    %11 = arith.cmpi ne, %10, %c0_i32_5 : i32
    scf.if %11 {
      %c0_6 = arith.constant 0 : index
      %c0_7 = arith.constant 0 : index
      %c0_8 = arith.constant 0 : index
      %12 = vector.load %arg3[%c0_6, %c0_7, %c0_8] : memref<1x1x256xf32, #tpu.memory_space<vmem>>, vector<1x1x256xf32>
      %13 = vector.shape_cast %12 : vector<1x1x256xf32> to vector<1x256xf32>
      %14 = arith.addf %13, %3 : vector<1x256xf32>
      %c0_9 = arith.constant 0 : index
      %c0_10 = arith.constant 0 : index
      %c0_11 = arith.constant 0 : index
      %15 = vector.load %arg3[%c0_9, %c0_10, %c0_11] : memref<1x1x256xf32, #tpu.memory_space<vmem>>, vector<1x1x256xf32>
      %16 = vector.shape_cast %15 : vector<1x1x256xf32> to vector<1x256xf32>
      %17 = vector.shape_cast %14 : vector<1x256xf32> to vector<1x1x256xf32>
      tpu.vector_store %arg3[%c0_9, %c0_10, %c0_11], %17 {strides = array<i32>} : memref<1x1x256xf32, #tpu.memory_space<vmem>>, vector<1x1x256xf32>,
      %c0_12 = arith.constant 0 : index
      %c0_13 = arith.constant 0 : index
      %c0_14 = arith.constant 0 : index
      %18 = vector.load %arg4[%c0_12, %c0_13, %c0_14] : memref<1x1x256xf32, #tpu.memory_space<vmem>>, vector<1x1x256xf32>
      %19 = vector.shape_cast %18 : vector<1x1x256xf32> to vector<1x256xf32>
      %20 = arith.maximumf %19, %5 : vector<1x256xf32>
      %c0_15 = arith.constant 0 : index
      %c0_16 = arith.constant 0 : index
      %c0_17 = arith.constant 0 : index
      %21 = vector.load %arg4[%c0_15, %c0_16, %c0_17] : memref<1x1x256xf32, #tpu.memory_space<vmem>>, vector<1x1x256xf32>
      %22 = vector.shape_cast %21 : vector<1x1x256xf32> to vector<1x256xf32>
      %23 = vector.shape_cast %20 : vector<1x256xf32> to vector<1x1x256xf32>
      tpu.vector_store %arg4[%c0_15, %c0_16, %c0_17], %23 {strides = array<i32>} : memref<1x1x256xf32, #tpu.memory_space<vmem>>, vector<1x1x256xf32>,
    } else {
    }
    return
  }
  func.func @transform_0(%arg0: i32, %arg1: i32) -> (i32, i32, i32) {
    %c0_i32 = arith.constant 0 : i32
    %c0_i32_0 = arith.constant 0 : i32
    return %arg0, %arg1, %c0_i32 : i32, i32, i32
  }
  func.func @transform_1(%arg0: i32, %arg1: i32) -> (i32, i32, i32) {
    %c0_i32 = arith.constant 0 : i32
    %c0_i32_0 = arith.constant 0 : i32
    %c0_i32_1 = arith.constant 0 : i32
    return %arg0, %c0_i32, %c0_i32_0 : i32, i32, i32
  }
  func.func @transform_2(%arg0: i32, %arg1: i32) -> (i32, i32, i32) {
    %c0_i32 = arith.constant 0 : i32
    %c0_i32_0 = arith.constant 0 : i32
    %c0_i32_1 = arith.constant 0 : i32
    return %arg0, %c0_i32, %c0_i32_0 : i32, i32, i32
  }
}

</mosaic_0001>

<bundles_post_ra>
// kernel: tpu_custom_call.1
= control target key start
LH: loop header
LB: loop body
LE: loop exit
PB: predicated region body
PF: predicated region fallthrough
CT: control target
= control target key end

     0   :  { %8 = vsyncpa [#allocation3], 0  ;;  %s921_s0 = inlined_call_operand.hbm [shape: f32[2,4,256], index: 0, kind: input, shape index: {}]   ;;  %s922_s1 = inlined_call_operand.hbm [shape: f32[2,1,256], index: 1, kind: output, shape index: {0}]   ;;  %s923_s2 = inlined_call_operand.hbm [shape: f32[2,1,256], index: 2, kind: output, shape index: {1}]  }
   0x1   :  { %10 = vsyncpa [#allocation3 + $0x1], 0 }
   0x2   :  { %11 = vsyncpa [#allocation4], 0 }
   0x3   :  { %13 = vsyncpa [#allocation4 + $0x1], 0 }
   0x4   :  { %14 = vsyncpa [#allocation7], 0 }
   0x5   :  { %16 = vsyncpa [#allocation7 + $0x1], 0  ;;  %s719_s9 = smov 0   ;;  %s721_s10 = smov 0  }
   0x6   :  { %s723_s11 = smov 0   ;;  %s725_s12 = smov 0  }
   0x7   :  { %s727_s13 = smov 0   ;;  %s729_s14 = smov 0  }
   0x8 LB: > { %s463_s15 = sadd.s32 4294967295, %s698_s14   ;;  %s464_s16 = sadd.s32 4294967294, %s698_s14   ;;  %s698_s14 = sphi %s729_s14, %s22_s14   ;;  %s694_s13 = sphi %s727_s13, %s939_s13   ;;  %s690_s12 = sphi %s725_s12, %s938_s12   ;;  %s686_s11 = sphi %s723_s11, %s937_s11   ;;  %s682_s10 = sphi %s721_s10, %s936_s10   ;;  %s678_s9 = sphi %s719_s9, %s935_s9  }
   0x9   : > { %s34_s17 = sadd.s32 1, %s694_s13  ;;  %s43_s18 = sadd.s32 1, %s686_s11 }
   0xa   : > { %p36_p0 = scmp.ge.s32.totalorder %s34_s17, 2  ;;  %p50_p1 = scmp.ne.s32.totalorder %s686_s11, %s682_s10 }
   0xb   : > { %p51_p2 = scmp.eq.s32.totalorder %s698_s14, 0  ;;  %p56_p3 = scmp.ne.s32.totalorder %s682_s10, %s678_s9 }
   0xc   : > { %s941_s17 = smov (%p36_p0, %s34_s17), 0  ;;  %p57_p5 = scmp.eq.s32.totalorder %s463_s15, 0 }
   0xd   : > { %p760_p4 = por %p51_p2, %p50_p1  ;;  %s38_s20 = ssub.s32 %s694_s13, %s941_s17 }
   0xe   : > { %p80_p6 = scmp.eq.s32.totalorder %s463_s15, 1  ;;  %p41_p7 = scmp.eq.s32.totalorder %s38_s20, 0 }
   0xf   : > { %p766_p8 = por %p57_p5, %p56_p3  ;;  %p86_p10 = scmp.eq.s32.totalorder %s464_s16, 1 }
  0x10   : > { %p770_p9 = por %p80_p6, %p50_p1  ;;  %p502_p13 = scmp.lt.s32.totalorder %s698_s14, 2 }
  0x11   : > { %s775_s23 = scalar_select %p41_p7, %s686_s11, %s43_s18  }
  0x12   : > { %s927_s22 = scalar_select %p770_p9, 1, 0 }
  0x13   : > { %p777_p11 = por %p86_p10, %p56_p3  ;;  %s132_s25 = sand.u32 1, %s686_s11  }
  0x14   : > { %s467_s26 = sshll.u32 %s132_s25, 3  ;;  %s482_s27 = sshll.u32 %s694_s13, 7 }
  0x15   : > { %s928_s24 = scalar_select %p777_p11, 1, 0 }
  0x16   : > { %s788_s30 = scalar_lea.hbm %s921_s0, %s482_s27  ;;  %s136_s3 = scalar_lea.vmem [#allocation2], %s467_s26 }
  0x17   : > { %s146_s4 = sshll.u32 %s136_s3, 4  ;;  %p794_p0 = pnand %p502_p13, %p760_p4  ;;  %s790_s4 = int_to_ptr.vmem [resolvable:$true] %s146_s4 }
  0x18   : > { %s133_s6 = scalar_lea.sflag [#allocation3], %s132_s25  ;;  %s554_s7 = scalar_lea.hbm %s788_s30, 128 }
  0x19   : > { %p555_p3 = scmp.ne.s32.totalorder %s788_s30, %s554_s7  ;;  %p556_p5 = pneg %p794_p0 }
  0x1a   : > { %s559_s16 = scalar_lea.hbm %s921_s0, 256  ;;  %p560_p4 = scmp.lt.u32.totalorder %s788_s30, %s921_s0 }
  0x1b   : > { %p557_p6 = pnand %p556_p5, %p555_p3  ;;  %p561_p10 = scmp.lt.u32.totalorder %s559_s16, %s554_s7 }
  0x1c   : > { %p563_p12 = scmp.lt.u32.totalorder %s554_s7, %s788_s30 }
  0x1d   : > { %p558_p7 = pneg %p557_p6  ;;  %p562_p13 = por %p561_p10, %p560_p4 }
  0x1f   : > { %p564_p1 = por %p563_p12, %p562_p13 }
  0x21   : > { %p565_p2 = pnand %p564_p1, %p558_p7 }
  0x23   : > { %568 = shalt.err (!%p565_p2)
}
  0x24   : > { %s569_s20 = scalar_lea.vmem %s790_s4, 128  ;;  %s700_s25 = smov [#allocation2]  }
  0x25   : > { %p570_p3 = scmp.ne.s32.totalorder %s790_s4, %s569_s20  ;;  %s574_s26 = sshll.u32 %s700_s25, 4  ;;  %s575_s26 = int_to_ptr.vmem [resolvable:$false] %s574_s26 }
  0x26   : > { %s576_s27 = scalar_lea.vmem %s575_s26, 256  ;;  %p577_p9 = scmp.lt.s32.totalorder %s790_s4, %s575_s26 }
  0x27   : > { %p572_p6 = pnand %p570_p3, %p556_p5  ;;  %p578_p4 = scmp.lt.s32.totalorder %s576_s27, %s569_s20 }
  0x29   : > { %p573_p11 = pneg %p572_p6  ;;  %p579_p10 = por %p578_p4, %p577_p9 }
  0x2b   : > { %p580_p12 = pnand %p579_p10, %p573_p11 }
  0x2d   : > { %583 = shalt.err (!%p580_p12)
}
  0x2e   : > { %494 = dma.hbm_to_vmem [thread:$0]  (!%p794_p0), %s788_s30, 128, %s790_s4, %s133_s6  }
  0x2f   : > { %p930_p1 = scmp.lt.s32.totalorder %s698_s14, 3  ;;  %p931_p2 = scmp.ge.s32.totalorder %s698_s14, 1 }
  0x31   : > { %p152_p5 = pnand %p931_p2, %p930_p1 }
  0x32   : > { %s830_s28 = sand.u32 (!%p152_p5), 1, %s682_s10  }
  0x33   : > { %155 = sbr.rel (%p152_p5) target bundleno = 118 (0x76), region = 24  ;;  %s471_s29 = sshll.u32 (!%p152_p5), %s830_s28, 3 }
  0x34   : > { %s158_s3 = scalar_lea.sflag (!%p152_p5), [#allocation3], %s830_s28  ;;  %s161_s7 = scalar_lea.vmem (!%p152_p5), [#allocation2], %s471_s29 }
  0x3a   : > { %665 = dma.done.wait (%p766_p8), %s158_s3, 128  }
  0x3b   : > { %667 = vsyncadd (%p766_p8), %s158_s3, 4294967168  ;;  %vm191_vm0 = vcmask 1043456   ;;  %v187_v0 = vld [vmem:[%s161_s7] sm:$0xff]  ;;  %v701_v12 = vmov 1966171168   ;;  %v230_v14 = vlaneseq  ;;  %s472_s21 = sshll.u32 %s830_s28, 1 }
  0x3c   : > { %v189_v1 = vcombine.high %v187_v0, %v187_v0  ;;  %v192_v2 = vsel %vm191_vm0, %v187_v0, 0.0  ;;  %v206_v3 = vsel %vm191_vm0, %v187_v0, -inf  ;;  %v228_v13 = vunpack.c.l.s4 %v701_v12  ;;  %s179_s30 = scalar_lea.vmem [#allocation5], %s472_s21  ;;  %s186_s5 = scalar_lea.vmem [#allocation6], %s472_s21 }
  0x3d   : > { %v193_v4 = vrot.slane %v192_v2, 4  ;;  %v207_v5 = vrot.slane %v206_v3, 4  ;;  %v231_v24 = vshrl.u32 %v230_v14, 7  ;;  %s336_s4 = sshll.u32 %s179_s30, 4  ;;  %s350_s6 = sshll.u32 %s186_s5, 4  ;;  %vm244_vm1 = vcmp.lt.s32.totalorder %v230_v14, 256  ;;  %s840_s4 = int_to_ptr.vmem [resolvable:$true] %s336_s4  ;;  %s842_s6 = int_to_ptr.vmem [resolvable:$true] %s350_s6 }
  0x3e   : > { %v199_v6 = vsel %vm191_vm0, %v189_v1, 0.0  ;;  %v213_v7 = vsel %vm191_vm0, %v189_v1, -inf  ;;  %v229_v23 = vunpack.c.0.s8 %v228_v13  ;;  %s483_s8 = sshll.u32 %s690_s12, 5  ;;  %s317_s25 = scalar_lea.sflag [#allocation4], %s830_s28 }
  0x3f   : > { %v194_v8 = vadd.f32 %v193_v4, %v192_v2  ;;  %v200_v9 = vrot.slane %v199_v6, 4  ;;  %v208_v10 = vmax.f32 %v206_v3, %v207_v5  ;;  %v214_v11 = vrot.slane %v213_v7, 4  ;;  %s847_s18 = scalar_lea.hbm %s922_s1, %s483_s8  ;;  %s852_s12 = scalar_lea.hbm %s923_s2, %s483_s8 }
  0x40   : > { %v232_v34 = vsub.s32 %v229_v23, %v231_v24  ;;  %s584_s26 = scalar_lea.vmem %s840_s4, 32  ;;  %p932_p9 = scmp.ne.s32.totalorder %s927_s22, 0 }
  0x41   : > { %v195_v15 = vrot.slane %v194_v8, 2  ;;  %v201_v16 = vadd.f32 %v200_v9, %v199_v6  ;;  %v209_v17 = vrot.slane %v208_v10, 2  ;;  %v215_v18 = vmax.f32 %v213_v7, %v214_v11  ;;  %p585_p8 = scmp.ne.s32.totalorder %s840_s4, %s584_s26  ;;  %s702_s27 = smov [#allocation5]  }
  0x42   : > { %s588_s29 = sshll.u32 %s702_s27, 4  ;;  %s589_s29 = int_to_ptr.vmem [resolvable:$false] %s588_s29 }
  0x43   : > { %v196_v19 = vadd.f32 %v195_v15, %v194_v8  ;;  %v202_v20 = vrot.slane %v201_v16, 2  ;;  %v210_v21 = vmax.f32 %v208_v10, %v209_v17  ;;  %v216_v22 = vrot.slane %v215_v18, 2  ;;  %p586_p11 = pnand %p585_p8, %p932_p9  ;;  %s590_s3 = scalar_lea.vmem %s589_s29, 64 }
  0x44   : > { %p591_p7 = scmp.lt.s32.totalorder %s840_s4, %s589_s29  ;;  %p592_p13 = scmp.lt.s32.totalorder %s590_s3, %s584_s26 }
  0x45   : > { %v197_v25 = vrot.slane %v196_v19, 1  ;;  %v203_v26 = vadd.f32 %v202_v20, %v201_v16  ;;  %v211_v27 = vrot.slane %v210_v21, 1  ;;  %v217_v28 = vmax.f32 %v215_v18, %v216_v22  ;;  %p587_p0 = pneg %p586_p11 }
  0x46   : > { %p593_p3 = por %p592_p13, %p591_p7 }
  0x47   : > { %v198_v29 = vadd.f32 %v197_v25, %v196_v19  ;;  %v204_v30 = vrot.slane %v203_v26, 1  ;;  %v212_v31 = vmax.f32 %v210_v21, %v211_v27  ;;  %v218_v32 = vrot.slane %v217_v28, 1 }
  0x48   : > { %p594_p6 = pnand %p593_p3, %p587_p0 }
  0x49   : > { %v205_v33 = vadd.f32 %v204_v30, %v203_v26  ;;  %v219_v35 = vmax.f32 %v217_v28, %v218_v32 }
  0x4b   : > { %v226_v36 = vcombine.low %v198_v29, %v205_v33  ;;  %v249_v37 = vcombine.low %v212_v31, %v219_v35 }
  0x4d   : > { %v233_v38 = vrot.slane %v226_v36, %v232_v34  ;;  %v256_v39 = vrot.slane %v249_v37, %v232_v34 }
  0x4f   : > { %v240_v40 = vrot.slane %v233_v38, %v232_v34  ;;  %v263_v41 = vrot.slane %v256_v39, %v232_v34 }
  0x51   : > { %246 = vst.msk [vmem:[%s179_s30] sm:$0x3] %vm244_vm1, %v240_v40  ;;  %265 = vst.msk [vmem:[%s186_s5] sm:$0x3] %vm244_vm1, %v263_v41 }
  0x52   : > { %597 = shalt.err (!%p594_p6)
}
  0x53   : > { %s598_s7 = scalar_lea.hbm %s847_s18, 32  ;;  %s602_s5 = scalar_lea.hbm %s922_s1, 64 }
  0x54   : > { %p599_p4 = scmp.ne.s32.totalorder %s847_s18, %s598_s7  ;;  %p603_p1 = scmp.lt.u32.totalorder %s847_s18, %s922_s1 }
  0x55   : > { %p604_p2 = scmp.lt.u32.totalorder %s602_s5, %s598_s7  ;;  %p606_p8 = scmp.lt.u32.totalorder %s598_s7, %s847_s18 }
  0x56   : > { %p600_p10 = pnand %p599_p4, %p932_p9 }
  0x57   : > { %p605_p5 = por %p604_p2, %p603_p1 }
  0x58   : > { %p601_p12 = pneg %p600_p10 }
  0x59   : > { %p607_p11 = por %p606_p8, %p605_p5 }
  0x5b   : > { %p608_p0 = pnand %p607_p11, %p601_p12 }
  0x5d   : > { %611 = shalt.err (!%p608_p0)
}
  0x5e   : > { %487 = dma.vmem_to_hbm [thread:$0]  (%p932_p9), %s840_s4, 32, %s847_s18, %s317_s25  }
  0x5f   : > { %s322_s16 = scalar_lea.sflag [#allocation7], %s830_s28  ;;  %s612_s19 = scalar_lea.vmem %s842_s6, 32 }
  0x60   : > { %p613_p7 = scmp.ne.s32.totalorder %s842_s6, %s612_s19  ;;  %s703_s20 = smov [#allocation6]  }
  0x61   : > { %s616_s26 = sshll.u32 %s703_s20, 4  ;;  %s617_s26 = int_to_ptr.vmem [resolvable:$false] %s616_s26 }
  0x62   : > { %p614_p13 = pnand %p613_p7, %p932_p9  ;;  %s618_s27 = scalar_lea.vmem %s617_s26, 64 }
  0x63   : > { %p619_p6 = scmp.lt.s32.totalorder %s842_s6, %s617_s26  ;;  %p620_p4 = scmp.lt.s32.totalorder %s618_s27, %s612_s19 }
  0x64   : > { %p615_p3 = pneg %p614_p13 }
  0x65   : > { %p621_p10 = por %p620_p4, %p619_p6 }
  0x67   : > { %p622_p12 = pnand %p621_p10, %p615_p3 }
  0x69   : > { %625 = shalt.err (!%p622_p12)
}
  0x6a   : > { %s626_s28 = scalar_lea.hbm %s852_s12, 32  ;;  %s630_s25 = scalar_lea.hbm %s923_s2, 64 }
  0x6b   : > { %p627_p1 = scmp.ne.s32.totalorder %s852_s12, %s626_s28  ;;  %p631_p8 = scmp.lt.u32.totalorder %s852_s12, %s923_s2 }
  0x6c   : > { %p632_p11 = scmp.lt.u32.totalorder %s630_s25, %s626_s28  ;;  %p634_p7 = scmp.lt.u32.totalorder %s626_s28, %s852_s12 }
  0x6d   : > { %p628_p2 = pnand %p627_p1, %p932_p9 }
  0x6e   : > { %p633_p0 = por %p632_p11, %p631_p8 }
  0x6f   : > { %p629_p5 = pneg %p628_p2 }
  0x70   : > { %p635_p13 = por %p634_p7, %p633_p0 }
  0x72   : > { %p636_p3 = pnand %p635_p13, %p629_p5 }
  0x74   : > { %639 = shalt.err (!%p636_p3)
}
  0x75   : > { %488 = dma.vmem_to_hbm [thread:$0]  (%p932_p9), %s842_s6, 32, %s852_s12, %s322_s16  }
  0x76 PF: > { %s362_s7 = sand.u32 1, %s678_s9   ;;  %p933_p6 = scmp.ne.s32.totalorder %s928_s24, 0 }
  0x77   : > { %p934_p4 = scmp.ge.s32.totalorder %s698_s14, 2  ;;  %s363_s21 = scalar_lea.sflag [#allocation4], %s362_s7 }
  0x79   : > { %p496_p10 = pnand %p934_p4, %p933_p6 }
  0x7b   : > { %669 = dma.done.wait (!%p496_p10), %s363_s21, 32  }
  0x7c   : > { %671 = vsyncadd (!%p496_p10), %s363_s21, 4294967264  ;;  %s372_s30 = scalar_lea.sflag [#allocation7], %s362_s7 }
  0x7d   : > { %673 = dma.done.wait (!%p496_p10), %s372_s30, 32  }
  0x7e   : > { %675 = vsyncadd (!%p496_p10), %s372_s30, 4294967264  ;;  %s22_s14 = sadd.s32 1, %s698_s14   ;;  %s935_s9 = smov %s682_s10 }
  0x7f   : > { %p19_p12 = scmp.ge.s32.totalorder %s22_s14, 4   ;;  %s936_s10 = smov %s686_s11 }
  0x80   : > { %s937_s11 = smov %s775_s23  ;;  %s938_s12 = smov %s694_s13 }
  0x81   : > { %s939_s13 = smov %s941_s17  ;;  %21 = sbr.rel (!%p19_p12) target bundleno = 8 (0x8), region = 94 }
  0x88   :  { %377 = vsyncpa [#allocation3], 1 }
  0x89   :  { %379 = vsyncpa [#allocation3 + $0x1], 1 }
  0x8a   :  { %380 = vsyncpa [#allocation4], 1 }
  0x8b   :  { %382 = vsyncpa [#allocation4 + $0x1], 1 }
  0x8c   :  { %383 = vsyncpa [#allocation7], 1 }
  0x8d   :  { %385 = vsyncpa [#allocation7 + $0x1], 1 }

</bundles_post_ra>
